<compile_context>
chip_gen: v6e
topology: v6e:2x2x1
jax: 0.10.0
libtpu: 0.0.40
codegen_flags: <defaults>
</compile_context>

<pallas_src>
import functools

import jax
import jax.numpy as jnp
from jax import lax
from jax.experimental import pallas as pl
from jax.experimental.pallas import tpu as pltpu


def _random_mask_kernel(threshold, hw_total, seed_ref, x_ref, o_ref):
    """One grid step = (TB batch rows) x (all C channels) x (T_HW pixels).

    seed_ref : SMEM scalar-prefetch ref, shape (1,), int32
    x_ref    : VMEM tile, (TB, C, T_HW)
    o_ref    : VMEM tile, (TB, C, T_HW)
    """
    bi = pl.program_id(0)
    hi = pl.program_id(1)
    tb, c, t_hw = x_ref.shape

    # Sublanes per vreg for this dtype.  If all channels fit in one sublane
    # group, compute the mask sublane-dense at (TB, C, T_HW): same number of
    # vregs as (TB, 1, T_HW) but no broadcast relayout in the select below.
    itemsize = jnp.dtype(x_ref.dtype).itemsize
    sub = max(8, 32 // itemsize)
    mask_c = c if c <= sub else 1

    shape = (tb, mask_c, t_hw)
    b_idx = (lax.broadcasted_iota(jnp.int32, shape, 0) + bi * tb).astype(jnp.uint32)
    p_idx = (lax.broadcasted_iota(jnp.int32, shape, 2) + hi * t_hw).astype(jnp.uint32)
    # Global (batch, pixel) counter, built in uint32 so huge B*H*W can't
    # overflow int32 before the hash.  Identical for every channel of a pixel.
    lin = b_idx * jnp.uint32(hw_total) + p_idx

    # Counter-based PRNG: seed mix + 2 rounds of (mul, xorshift).  Cheap on the
    # VALU and plenty for a single Bernoulli threshold compare.
    seed_u = seed_ref[0].astype(jnp.uint32)
    k = lin ^ (seed_u * jnp.uint32(0x9E3779B1))     # scalar mult, vector xor
    k = k * jnp.uint32(0x7FEB352D)
    k = k ^ (k >> 15)
    k = k * jnp.uint32(0x846CA68B)
    k = k ^ (k >> 16)

    # uniform(0,1) > p   <=>   k > round(p * 2**32)   (integer-domain compare)
    keep = k > jnp.uint32(threshold)                 # (TB, mask_c, T_HW) bool
    o_ref[...] = jnp.where(keep, x_ref[...], 0)      # broadcasts over channels


def _vmem_budget():
    """Per-buffer tile budget in bytes, generation-aware where possible."""
    try:
        info = pltpu.get_tpu_info()
        vmem = getattr(info, "vmem_capacity_bytes", 0) or 0
        if vmem >= 96 * 1024 * 1024:          # v5e / v6e: 128 MiB VMEM
            return 4 * 1024 * 1024
    except Exception:                          # unknown chip / emulation
        pass
    return 2 * 1024 * 1024                     # v7x (64 MiB VMEM) & default


def _pick_tiles(batch, channels, hw, itemsize, target_bytes, min_steps=8):
    """Choose (TB, T_HW) so one physical tile fits target_bytes and the grid
    keeps >= min_steps steps (when the problem size allows)."""
    sub = max(8, 32 // itemsize)               # sublane packing for this dtype
    c_pad = -(-channels // sub) * sub          # physical channel extent

    # Spatial tile candidates: 128-lane multiples dividing H*W exactly, or the
    # full (possibly ragged) extent, which is always a legal block dim.
    if hw % 128 == 0:
        n = hw // 128
        cands = [d * 128 for d in range(1, n + 1) if n % d == 0]
    else:
        cands = [hw]

    def row_bytes(t):                          # physical bytes of (1, C, t)
        return c_pad * (-(-t // 128) * 128) * itemsize

    t_hw = cands[0]
    for t in cands:                            # largest spatial tile that fits
        if row_bytes(t) <= target_bytes:
            t_hw = t

    tb_cap = max(1, target_bytes // row_bytes(t_hw))
    tb = max(d for d in range(1, batch + 1) if batch % d == 0 and d <= tb_cap)

    def steps(tb_, t_):
        return (batch // tb_) * (hw // t_)

    # Never let the grid collapse to a couple of steps: shrink TB, then T_HW.
    while steps(tb, t_hw) < min_steps:
        if tb > 1:
            tb = max(d for d in range(1, tb) if batch % d == 0)
        else:
            smaller = [t for t in cands if t < t_hw]
            if not smaller:
                break
            t_hw = smaller[-1]
    return tb, t_hw


def random_mask_2d(x, seed, *, p=0.5, training=True):
    """Pallas implementation of RandomMask2D.forward.

    x    : (B, C, H, W) array (NCHW, like PyTorch)
    seed : python int or int32 scalar — explicit RNG seed
    """
    if not training:
        return x

    B, C, H, W = x.shape
    HW = H * W
    x_flat = x.reshape(B, C, HW)               # metadata-only reshape

    itemsize = jnp.dtype(x.dtype).itemsize
    TB, T_HW = _pick_tiles(B, C, HW, itemsize, _vmem_budget())
    grid = (B // TB, HW // T_HW)

    # Integer threshold for "uniform > p"; clamp so p >= 1 doesn't wrap uint32.
    threshold = min(max(int(round(float(p) * 2.0 ** 32)), 0), 2 ** 32 - 1)
    seed_arr = jnp.asarray([seed], dtype=jnp.int32)

    kernel = functools.partial(_random_mask_kernel, threshold, HW)
    nbytes = B * C * HW * itemsize

    out_flat = pl.pallas_call(
        kernel,
        out_shape=jax.ShapeDtypeStruct((B, C, HW), x.dtype),
        grid_spec=pltpu.PrefetchScalarGridSpec(
            num_scalar_prefetch=1,
            grid=grid,
            in_specs=[pl.BlockSpec((TB, C, T_HW), lambda b, h, seed: (b, 0, h))],
            out_specs=pl.BlockSpec((TB, C, T_HW), lambda b, h, seed: (b, 0, h)),
        ),
        compiler_params=pltpu.CompilerParams(
            dimension_semantics=("parallel", "parallel"),
            vmem_limit_bytes=32 * 1024 * 1024,
        ),
        cost_estimate=pl.CostEstimate(
            flops=B * C * HW, transcendentals=0, bytes_accessed=2 * nbytes),
    )(seed_arr, x_flat)

    return out_flat.reshape(B, C, H, W)        # metadata-only reshape


if __name__ == "__main__":
    key = jax.random.PRNGKey(0)
    B, C, H, W = 2, 4, 16, 16
    x = jax.random.normal(key, (B, C, H, W), dtype=jnp.float32)

    p = 0.5
    train_fn = jax.jit(lambda xx, s: random_mask_2d(xx, s, p=p, training=True))
    y = jax.block_until_ready(train_fn(x, 1234))

    # Sanity checks on the semantics:
    assert y.shape == x.shape and y.dtype == x.dtype
    zero_pat = (y == 0.0)
    # mask is shared across channels: zero pattern identical for every channel
    assert bool(jnp.all(zero_pat == zero_pat[:, :1, :, :]))
    # non-masked pixels pass through unchanged
    assert bool(jnp.all(jnp.where(~zero_pat, y == x, True)))
    # masked fraction is roughly p
    frac = float(jnp.mean(zero_pat[:, 0].astype(jnp.float32)))
    assert 0.25 < frac < 0.75, frac
    # different seed -> different mask (overwhelmingly likely)
    y2 = jax.block_until_ready(train_fn(x, 999))
    assert not bool(jnp.all((y2 == 0.0) == zero_pat))
    # eval mode is identity
    y_eval = jax.block_until_ready(random_mask_2d(x, 1234, p=p, training=False))
    assert bool(jnp.all(y_eval == x))

    print("KERNEL_OK")
</pallas_src>

<mosaic_0001>
module attributes {stable_mosaic.version = 11 : i64} {
  func.func @_random_mask_kernel(%arg0: i32, %arg1: i32, %arg2: memref<1xi32, #tpu.memory_space<smem>>, %arg3: memref<1x4x128xf32, #tpu.memory_space<vmem>>, %arg4: memref<1x4x128xf32, #tpu.memory_space<vmem>>) attributes {dimension_semantics = [#tpu.dimension_semantics<parallel>, #tpu.dimension_semantics<parallel>], iteration_bounds = array<i64: 2, 2>, scalar_prefetch = 1 : i64, scratch_operands = 0 : i64, tpu.core_type = #tpu.core_type<tc>, window_params = [{transform_indices = @transform_0, window_bounds = array<i64: 1, 4, 128>}, {transform_indices = @transform_1, window_bounds = array<i64: 1, 4, 128>}]} {
    %0 = tpu.iota {dimensions = array<i32: 0>} : vector<1x4x128xi32>
    %c1_i32 = arith.constant 1 : i32
    %1 = arith.muli %arg0, %c1_i32 : i32
    %2 = vector.broadcast %1 : i32 to vector<1x4x128xi32>
    %3 = arith.addi %0, %2 : vector<1x4x128xi32>
    %4 = tpu.iota {dimensions = array<i32: 2>} : vector<1x4x128xi32>
    %c128_i32 = arith.constant 128 : i32
    %5 = arith.muli %arg1, %c128_i32 : i32
    %6 = vector.broadcast %5 : i32 to vector<1x4x128xi32>
    %7 = arith.addi %4, %6 : vector<1x4x128xi32>
    %c256_i32 = arith.constant 256 : i32
    %8 = vector.broadcast %c256_i32 : i32 to vector<1x4x128xi32>
    %9 = arith.muli %3, %8 : vector<1x4x128xi32>
    %10 = arith.addi %9, %7 : vector<1x4x128xi32>
    %c0 = arith.constant 0 : index
    %11 = memref.load %arg2[%c0] : memref<1xi32, #tpu.memory_space<smem>>
    %c-1640531535_i32 = arith.constant -1640531535 : i32
    %12 = arith.muli %11, %c-1640531535_i32 : i32
    %13 = vector.broadcast %12 : i32 to vector<1x4x128xi32>
    %14 = arith.xori %10, %13 : vector<1x4x128xi32>
    %c2146121005_i32 = arith.constant 2146121005 : i32
    %15 = vector.broadcast %c2146121005_i32 : i32 to vector<1x4x128xi32>
    %16 = arith.muli %14, %15 : vector<1x4x128xi32>
    %c15_i32 = arith.constant 15 : i32
    %17 = vector.broadcast %c15_i32 : i32 to vector<1x4x128xi32>
    %18 = arith.shrui %16, %17 : vector<1x4x128xi32>
    %19 = arith.xori %16, %18 : vector<1x4x128xi32>
    %c-2073254261_i32 = arith.constant -2073254261 : i32
    %20 = vector.broadcast %c-2073254261_i32 : i32 to vector<1x4x128xi32>
    %21 = arith.muli %19, %20 : vector<1x4x128xi32>
    %c16_i32 = arith.constant 16 : i32
    %22 = vector.broadcast %c16_i32 : i32 to vector<1x4x128xi32>
    %23 = arith.shrui %21, %22 : vector<1x4x128xi32>
    %24 = arith.xori %21, %23 : vector<1x4x128xi32>
    %c-2147483648_i32 = arith.constant -2147483648 : i32
    %25 = vector.broadcast %c-2147483648_i32 : i32 to vector<1x4x128xi32>
    %26 = arith.cmpi ugt, %24, %25 : vector<1x4x128xi32>
    %c0_0 = arith.constant 0 : index
    %c0_1 = arith.constant 0 : index
    %c0_2 = arith.constant 0 : index
    %27 = vector.load %arg3[%c0_0, %c0_1, %c0_2] : memref<1x4x128xf32, #tpu.memory_space<vmem>>, vector<1x4x128xf32>
    %c0_i32 = arith.constant 0 : i32
    %28 = arith.sitofp %c0_i32 : i32 to f32
    %29 = vector.broadcast %28 : f32 to vector<1x4x128xf32>
    %30 = arith.select %26, %27, %29 : vector<1x4x128xi1>, vector<1x4x128xf32>
    %c0_3 = arith.constant 0 : index
    %c0_4 = arith.constant 0 : index
    %c0_5 = arith.constant 0 : index
    %31 = vector.load %arg4[%c0_3, %c0_4, %c0_5] : memref<1x4x128xf32, #tpu.memory_space<vmem>>, vector<1x4x128xf32>
    tpu.vector_store %arg4[%c0_3, %c0_4, %c0_5], %30 {strides = array<i32>} : memref<1x4x128xf32, #tpu.memory_space<vmem>>, vector<1x4x128xf32>,
    return
  }
  func.func @transform_0(%arg0: i32, %arg1: i32, %arg2: memref<1xi32, #tpu.memory_space<smem>>) -> (i32, i32, i32) {
    %c0_i32 = arith.constant 0 : i32
    %c0_i32_0 = arith.constant 0 : i32
    return %arg0, %c0_i32, %arg1 : i32, i32, i32
  }
  func.func @transform_1(%arg0: i32, %arg1: i32, %arg2: memref<1xi32, #tpu.memory_space<smem>>) -> (i32, i32, i32) {
    %c0_i32 = arith.constant 0 : i32
    %c0_i32_0 = arith.constant 0 : i32
    return %arg0, %c0_i32, %arg1 : i32, i32, i32
  }
}

</mosaic_0001>

<bundles_post_ra>
// kernel: _lambda_.1
= control target key start
LH: loop header
LB: loop body
LE: loop exit
PB: predicated region body
PF: predicated region fallthrough
CT: control target
= control target key end

     0   :  { %s368_s11 = smov 0   ;;  %s370_s12 = smov 0   ;;  %s419_s0 = inlined_call_operand.<no memory space> [shape: s32[1], index: 0, kind: input, shape index: {}]   ;;  %s420_s1 = inlined_call_operand.vmem [shape: f32[2,4,256], index: 1, kind: input, shape index: {}]   ;;  %s421_s2 = inlined_call_operand.vmem [shape: f32[2,4,256], index: 2, kind: output, shape index: {}]  }
   0x1   :  { %7 = sst [smem:[#allocation3]] %s419_s0  ;;  %s372_s13 = smov 0  }
   0x2   :  { %s374_s14 = smov 0   ;;  %s376_s15 = smov 0  }
   0x3 LB: > { %s22_s0 = sadd.s32 1, %s340_s13  ;;  %s25_s16 = sadd.s32 1, %s344_s14  ;;  %s348_s15 = sphi %s376_s15, %s13_s15   ;;  %s344_s14 = sphi %s374_s14, %s425_s14   ;;  %s340_s13 = sphi %s372_s13, %s424_s13   ;;  %s336_s12 = sphi %s370_s12, %s423_s12   ;;  %s332_s11 = sphi %s368_s11, %s422_s11  }
   0x4   : > { %p23_p0 = scmp.ge.s32.totalorder %s22_s0, 2  ;;  %p262_p1 = scmp.ge.s32.totalorder %s348_s15, 1 }
   0x5   : > { %p108_p2 = scmp.lt.s32.totalorder %s348_s15, 5 }
   0x6   : > { %s427_s0 = smov (%p23_p0, %s22_s0), 0  ;;  %s429_s16 = smov (!%p23_p0, %s25_s16), %s344_s14 }
   0x7   : > { %p109_p3 = pnand %p262_p1, %p108_p2  ;;  %p27_p4 = scmp.ge.s32.totalorder %s429_s16, 2 }
   0x8   : > { %s267_s17 = sshll.u32 (!%p109_p3), %s332_s11, 7  ;;  %s158_s18 = sld [smem:[#allocation3]] (!%p109_p3) }
   0x9   : > { %s431_s16 = smov (%p27_p4, %s429_s16), 0  ;;  %112 = sbr.rel (%p109_p3) target bundleno = 39 (0x27), region = 24 }
   0xa   : > { %p134_p5 = scmp.lt.s32.totalorder (!%p109_p3), %s336_s12, 1  ;;  %p136_p6 = scmp.lt.s32.totalorder (!%p109_p3), %s332_s11, 1 }
   0xe   : > { %v150_v0 = vstv %s336_s12  ;;  %v151_v1 = vlaneseq  ;;  %v154_v3 = vstv %s267_s17  ;;  %s433_s12 = smov (!%p134_p5, %s336_s12), 1  ;;  %s159_s19 = smul.u32 2654435761, %s158_s18 }
   0xf   : > { %v156_v4 = vmul.u32 256, %v150_v0  ;;  %s435_s11 = smov (!%p136_p6, %s332_s11), 1  ;;  %s263_s20 = sshll.u32 %s433_s12, 1 }
  0x10   : > { %v152_v2 = vand.u32 127, %v151_v1  ;;  %v160_v7 = vstv %s159_s19  ;;  %s139_s21 = sadd.s32 %s263_s20, %s435_s11 }
  0x11   : > { %s264_s22 = sshll.u32 %s139_s21, 2 }
  0x12   : > { %v155_v5 = vadd.s32 %v154_v3, %v152_v2  ;;  %s141_s25 = scalar_lea.vmem %s420_s1, %s264_s22  ;;  %s149_s28 = scalar_lea.vmem %s421_s2, %s264_s22 }
  0x13   : > { %v169_v15 = vld [vmem:[%s141_s25] sm:$0xf] }
  0x14   : > { %v157_v6 = vadd.s32 %v156_v4, %v155_v5 }
  0x16   : > { %v161_v8 = vxor.u32 %v160_v7, %v157_v6 }
  0x18   : > { %v162_v9 = vmul.u32 2146121005, %v161_v8 }
  0x1a   : > { %v163_v10 = vshrl.u32 %v162_v9, 15 }
  0x1c   : > { %v164_v11 = vxor.u32 %v163_v10, %v162_v9 }
  0x1e   : > { %v165_v12 = vmul.u32 2221713035, %v164_v11 }
  0x20   : > { %v166_v13 = vshrl.u32 %v165_v12, 16 }
  0x22   : > { %v167_v14 = vxor.u32 %v166_v13, %v165_v12 }
  0x24   : > { %vm168_vm0 = vcmp.gt.u32.totalorder %v167_v14, 2147483648 }
  0x25   : > { %v170_v16 = vsel %vm168_vm0, %v169_v15, 0.0 }
  0x26   : > { %171 = vst [vmem:[%s149_s28] sm:$0xf] %v170_v16 }
  0x27 PF: > { %s13_s15 = sadd.s32 1, %s348_s15   ;;  %s422_s11 = smov %s340_s13 }
  0x28   : > { %p10_p7 = scmp.ge.s32.totalorder %s13_s15, 6   ;;  %s423_s12 = smov %s344_s14 }
  0x29   : > { %s424_s13 = smov %s427_s0  ;;  %s425_s14 = smov %s431_s16 }
  0x2a   :  { %12 = sbr.rel (!%p10_p7) target bundleno = 3 (0x3), region = 54 }

</bundles_post_ra>
